<compile_context>
chip_gen: v5e
topology: v5e:2x2
jax: 0.10.0
libtpu: 0.0.40
codegen_flags: <defaults>
</compile_context>

<pallas_src>
import jax
import jax.numpy as jnp
from jax.experimental import pallas as pl
from jax.experimental.pallas import tpu as pltpu

SEQ_LEN = 8
INPUT_SIZE = 4
HIDDEN = 32
OUTPUT_SIZE = 1


def _round_up(n, m):
    return -(-n // m) * m


def _slab_layout(in_sz, hidden):
    """Row offsets of each parameter block inside the packed constant slab."""
    row_wih = 0
    row_whh = _round_up(in_sz, 8)      # keep the big W_hh^T block 8-sublane aligned
    row_b = row_whh + hidden
    row_wl = row_b + 1
    row_bl = row_wl + 1
    n_rows = _round_up(row_bl + 1, 8)
    return row_wih, row_whh, row_b, row_wl, row_bl, n_rows


def lstm1d_kernel(x_ref, slab_ref, out_ref):
    """Full LSTM recurrence + final linear layer, entirely in VMEM / vregs.

    x_ref    : (T, input_size)
    slab_ref : (n_rows, 4H) packed constants
                 rows [0:in)            W_ih^T   (gate order i,f,o,g)
                 rows [row_whh:+H)      W_hh^T   (gate order i,f,o,g)
                 row  row_b             b_ih + b_hh
                 row  row_wl, lanes :H  W_linear (output_size == 1)
                 row  row_bl, lane 0    b_linear
    out_ref  : (1, 1) -- prediction for the LAST timestep only
    """
    T, in_sz = x_ref.shape
    G = slab_ref.shape[1]
    H = G // 4
    row_wih, row_whh, row_b, row_wl, row_bl, _ = _slab_layout(in_sz, H)

    # One-time carve-up of the single packed slab (static slices -> plain loads).
    wih = slab_ref[row_wih:row_wih + in_sz, :]        # (in, 4H)
    whh = slab_ref[row_whh:row_whh + H, :]            # (H, 4H)
    b = slab_ref[row_b:row_b + 1, :]                  # (1, 4H)
    wl = slab_ref[row_wl:row_wl + 1, 0:H]             # (1, H)
    bl = slab_ref[row_bl:row_bl + 1, 0:1]             # (1, 1)

    # Hoisted input projection for ALL timesteps: one well-shaped matmul off the
    # serial path instead of T degenerate (1,in)@(in,4H) products.
    gates_x = (
        jnp.dot(x_ref[...], wih, preferred_element_type=jnp.float32) + b
    )  # (T, 4H)

    # Hoisted identity mask: used each step to relayout h (1,H) -> (H,1) with a
    # VPU multiply + lane reduce (avoids per-step transpose/reshape lowering).
    rows = jax.lax.broadcasted_iota(jnp.int32, (H, H), 0)
    cols = jax.lax.broadcasted_iota(jnp.int32, (H, H), 1)
    eye = (rows == cols).astype(jnp.float32)          # (H, H)

    # h / c live in vregs across the recurrence (no VMEM store->load per step).
    h = jnp.zeros((1, H), jnp.float32)
    h_col = jnp.zeros((H, 1), jnp.float32)
    c = jnp.zeros((1, H), jnp.float32)

    # T is a small static constant -> fully unrolled; the scheduler can interleave
    # VPU / XLU / EUP work across adjacent steps where dependencies allow.
    for t in range(T):
        # Recurrent projection on the VPU/XLU instead of an M=1 MXU matmul:
        # broadcast the h column across lanes, multiply with W_hh^T (H,4H),
        # reduce across sublanes -> (1,4H).
        recur = jnp.sum(h_col * whh, axis=0, keepdims=True)
        z = gates_x[t:t + 1, :] + recur                # (1, 4H)

        # Full-width nonlinearities: one sigmoid + one tanh vreg op per step.
        sig = jax.nn.sigmoid(z)                        # i,f,o lanes valid
        th = jnp.tanh(z)                               # g lanes valid
        i_g = sig[:, 0:H]
        f_g = sig[:, H:2 * H]
        o_g = sig[:, 2 * H:3 * H]
        g_g = th[:, 3 * H:4 * H]

        c = f_g * c + i_g * g_g
        h = o_g * jnp.tanh(c)                          # (1, H)

        if t + 1 < T:
            # Row -> column relayout of h for the next step's VPU recurrence:
            # identity-mask multiply + lane reduce (VPU + XLU only).
            h_col = jnp.sum(h * eye, axis=1, keepdims=True)   # (H, 1)

    # Final linear (output_size == 1): VPU multiply + lane reduce.
    out_ref[...] = jnp.sum(h * wl, axis=-1, keepdims=True) + bl


def _reorder_gate_blocks(w):
    """Permute PyTorch gate blocks (i, f, g, o) -> (i, f, o, g) along axis 0."""
    H = w.shape[0] // 4
    return jnp.concatenate(
        [w[0:H], w[H:2 * H], w[3 * H:4 * H], w[2 * H:3 * H]], axis=0
    )


def lstm1d_forward(x, w_ih, w_hh, b_ih, b_hh, w_lin, b_lin):
    """x: (T, input_size). Returns prediction for the last timestep, shape (output_size,).

    Weight shapes follow nn.LSTM / nn.Linear:
      w_ih: (4H, input_size), w_hh: (4H, H), b_ih/b_hh: (4H,),
      w_lin: (output_size, H), b_lin: (output_size,)
    """
    T, in_sz = x.shape
    H = w_hh.shape[1]
    G = 4 * H
    out_sz = w_lin.shape[0]
    assert out_sz == 1, "LSTM1D default output_size=1 (VPU reduce epilogue)"

    # Permute gate blocks consistently on W_ih, W_hh and the fused bias.
    wih_p = _reorder_gate_blocks(w_ih.astype(jnp.float32))       # (4H, in)
    whh_p = _reorder_gate_blocks(w_hh.astype(jnp.float32))       # (4H, H)
    b_p = _reorder_gate_blocks((b_ih + b_hh).astype(jnp.float32))  # (4H,)

    # Pack every constant operand into one (n_rows, 4H) f32 slab -> single DMA.
    row_wih, row_whh, row_b, row_wl, row_bl, n_rows = _slab_layout(in_sz, H)
    slab = jnp.zeros((n_rows, G), jnp.float32)
    slab = slab.at[row_wih:row_wih + in_sz, :].set(wih_p.T)      # W_ih^T
    slab = slab.at[row_whh:row_whh + H, :].set(whh_p.T)          # W_hh^T
    slab = slab.at[row_b, :].set(b_p)
    slab = slab.at[row_wl, :H].set(w_lin.astype(jnp.float32).reshape(H))
    slab = slab.at[row_bl, 0].set(b_lin.astype(jnp.float32)[0])

    vmem = pl.BlockSpec(memory_space=pltpu.MemorySpace.VMEM)
    out = pl.pallas_call(
        lstm1d_kernel,
        out_shape=jax.ShapeDtypeStruct((1, out_sz), jnp.float32),
        in_specs=[vmem, vmem],
        out_specs=vmem,
    )(x.astype(jnp.float32), slab)
    return out.reshape(out_sz)


if __name__ == "__main__":
    key = jax.random.PRNGKey(0)
    k_x, k_wih, k_whh, k_bih, k_bhh, k_wl, k_bl = jax.random.split(key, 7)

    # deterministic synthetic parameters (shapes follow nn.LSTM / nn.Linear)
    x = jax.random.normal(k_x, (SEQ_LEN, INPUT_SIZE), dtype=jnp.float32)
    scale = 0.1
    w_ih = scale * jax.random.normal(k_wih, (4 * HIDDEN, INPUT_SIZE), dtype=jnp.float32)
    w_hh = scale * jax.random.normal(k_whh, (4 * HIDDEN, HIDDEN), dtype=jnp.float32)
    b_ih = scale * jax.random.normal(k_bih, (4 * HIDDEN,), dtype=jnp.float32)
    b_hh = scale * jax.random.normal(k_bhh, (4 * HIDDEN,), dtype=jnp.float32)
    w_lin = scale * jax.random.normal(k_wl, (OUTPUT_SIZE, HIDDEN), dtype=jnp.float32)
    b_lin = scale * jax.random.normal(k_bl, (OUTPUT_SIZE,), dtype=jnp.float32)

    pred = lstm1d_forward(x, w_ih, w_hh, b_ih, b_hh, w_lin, b_lin)
    jax.block_until_ready(pred)

    # pure-JAX reference of the recurrence in original PyTorch gate order (i,f,g,o)
    def ref_forward(x):
        h = jnp.zeros((HIDDEN,), jnp.float32)
        c = jnp.zeros((HIDDEN,), jnp.float32)
        for t in range(SEQ_LEN):
            g = w_ih @ x[t] + b_ih + w_hh @ h + b_hh
            i = jax.nn.sigmoid(g[0:HIDDEN])
            f = jax.nn.sigmoid(g[HIDDEN:2 * HIDDEN])
            gg = jnp.tanh(g[2 * HIDDEN:3 * HIDDEN])
            o = jax.nn.sigmoid(g[3 * HIDDEN:4 * HIDDEN])
            c = f * c + i * gg
            h = o * jnp.tanh(c)
        return w_lin @ h + b_lin

    ref = ref_forward(x)
    assert jnp.allclose(pred, ref, atol=1e-4, rtol=1e-4), (pred, ref)
    print("KERNEL_OK")
</pallas_src>

<mosaic_0001>
module attributes {stable_mosaic.version = 11 : i64} {
  func.func @lstm1d_kernel(%arg0: memref<8x4xf32, #tpu.memory_space<vmem>>, %arg1: memref<48x128xf32, #tpu.memory_space<vmem>>, %arg2: memref<1x1xf32, #tpu.memory_space<vmem>>) attributes {dimension_semantics = [], scalar_prefetch = 0 : i64, scratch_operands = 0 : i64, tpu.core_type = #tpu.core_type<tc>} {
    %c0 = arith.constant 0 : index
    %c0_0 = arith.constant 0 : index
    %0 = vector.load %arg1[%c0, %c0_0] : memref<48x128xf32, #tpu.memory_space<vmem>>, vector<4x128xf32>
    %c8 = arith.constant 8 : index
    %c0_1 = arith.constant 0 : index
    %1 = vector.load %arg1[%c8, %c0_1] : memref<48x128xf32, #tpu.memory_space<vmem>>, vector<32x128xf32>
    %c40 = arith.constant 40 : index
    %c0_2 = arith.constant 0 : index
    %2 = vector.load %arg1[%c40, %c0_2] : memref<48x128xf32, #tpu.memory_space<vmem>>, vector<1x128xf32>
    %c41 = arith.constant 41 : index
    %c0_3 = arith.constant 0 : index
    %3 = vector.load %arg1[%c41, %c0_3] : memref<48x128xf32, #tpu.memory_space<vmem>>, vector<1x32xf32>
    %c42 = arith.constant 42 : index
    %c0_4 = arith.constant 0 : index
    %4 = vector.load %arg1[%c42, %c0_4] : memref<48x128xf32, #tpu.memory_space<vmem>>, vector<1x1xf32>
    %c0_5 = arith.constant 0 : index
    %c0_6 = arith.constant 0 : index
    %5 = vector.load %arg0[%c0_5, %c0_6] : memref<8x4xf32, #tpu.memory_space<vmem>>, vector<8x4xf32>
    %cst = arith.constant dense<0.000000e+00> : vector<8x128xf32>
    %6 = tpu.matmul %5, %0, %cst {dimension_numbers = #tpu.dot_dimension_numbers<[1], [0], [0], [1], [0, 0, 1, 1], [], []>} : vector<8x4xf32>, vector<4x128xf32>, vector<8x128xf32> -> vector<8x128xf32>
    %7 = vector.broadcast %2 : vector<1x128xf32> to vector<8x128xf32>
    %8 = arith.addf %6, %7 : vector<8x128xf32>
    %9 = tpu.iota {dimensions = array<i32: 0>} : vector<32x32xi32>
    %10 = tpu.iota {dimensions = array<i32: 1>} : vector<32x32xi32>
    %11 = arith.cmpi eq, %9, %10 : vector<32x32xi32>
    %12 = arith.extui %11 : vector<32x32xi1> to vector<32x32xi32>
    %13 = arith.sitofp %12 : vector<32x32xi32> to vector<32x32xf32>
    %cst_7 = arith.constant 0.000000e+00 : f32
    %14 = vector.broadcast %cst_7 : f32 to vector<32x1xf32>
    %cst_8 = arith.constant 0.000000e+00 : f32
    %15 = vector.broadcast %cst_8 : f32 to vector<1x32xf32>
    %16 = vector.broadcast %14 : vector<32x1xf32> to vector<32x128xf32>
    %17 = arith.mulf %16, %1 : vector<32x128xf32>
    %cst_9 = arith.constant dense<0.000000e+00> : vector<128xf32>
    %18 = vector.multi_reduction <add>, %17, %cst_9 [0] : vector<32x128xf32> to vector<128xf32>
    %19 = vector.shape_cast %18 : vector<128xf32> to vector<1x128xf32>
    %20 = vector.extract_strided_slice %8 {offsets = [0, 0], sizes = [1, 128], strides = [1, 1]} : vector<8x128xf32> to vector<1x128xf32>
    %21 = arith.addf %20, %19 : vector<1x128xf32>
    %22 = arith.negf %21 : vector<1x128xf32>
    %23 = math.exp %22 : vector<1x128xf32>
    %cst_10 = arith.constant 1.000000e+00 : f32
    %24 = vector.broadcast %cst_10 : f32 to vector<1x128xf32>
    %25 = arith.addf %24, %23 : vector<1x128xf32>
    %26 = arith.divf %24, %25 : vector<1x128xf32>
    %27 = math.tanh %21 : vector<1x128xf32>
    %28 = vector.extract_strided_slice %26 {offsets = [0, 0], sizes = [1, 32], strides = [1, 1]} : vector<1x128xf32> to vector<1x32xf32>
    %29 = vector.extract_strided_slice %26 {offsets = [0, 32], sizes = [1, 32], strides = [1, 1]} : vector<1x128xf32> to vector<1x32xf32>
    %30 = vector.extract_strided_slice %26 {offsets = [0, 64], sizes = [1, 32], strides = [1, 1]} : vector<1x128xf32> to vector<1x32xf32>
    %31 = vector.extract_strided_slice %27 {offsets = [0, 96], sizes = [1, 32], strides = [1, 1]} : vector<1x128xf32> to vector<1x32xf32>
    %32 = arith.mulf %29, %15 : vector<1x32xf32>
    %33 = arith.mulf %28, %31 : vector<1x32xf32>
    %34 = arith.addf %32, %33 : vector<1x32xf32>
    %35 = math.tanh %34 : vector<1x32xf32>
    %36 = arith.mulf %30, %35 : vector<1x32xf32>
    %37 = vector.broadcast %36 : vector<1x32xf32> to vector<32x32xf32>
    %38 = arith.mulf %37, %13 : vector<32x32xf32>
    %cst_11 = arith.constant dense<0.000000e+00> : vector<32xf32>
    %39 = vector.multi_reduction <add>, %38, %cst_11 [1] : vector<32x32xf32> to vector<32xf32>
    %40 = vector.shape_cast %39 : vector<32xf32> to vector<32x1xf32>
    %41 = vector.broadcast %40 : vector<32x1xf32> to vector<32x128xf32>
    %42 = arith.mulf %41, %1 : vector<32x128xf32>
    %cst_12 = arith.constant dense<0.000000e+00> : vector<128xf32>
    %43 = vector.multi_reduction <add>, %42, %cst_12 [0] : vector<32x128xf32> to vector<128xf32>
    %44 = vector.shape_cast %43 : vector<128xf32> to vector<1x128xf32>
    %45 = vector.extract_strided_slice %8 {offsets = [1, 0], sizes = [1, 128], strides = [1, 1]} : vector<8x128xf32> to vector<1x128xf32>
    %46 = arith.addf %45, %44 : vector<1x128xf32>
    %47 = arith.negf %46 : vector<1x128xf32>
    %48 = math.exp %47 : vector<1x128xf32>
    %cst_13 = arith.constant 1.000000e+00 : f32
    %49 = vector.broadcast %cst_13 : f32 to vector<1x128xf32>
    %50 = arith.addf %49, %48 : vector<1x128xf32>
    %51 = arith.divf %49, %50 : vector<1x128xf32>
    %52 = math.tanh %46 : vector<1x128xf32>
    %53 = vector.extract_strided_slice %51 {offsets = [0, 0], sizes = [1, 32], strides = [1, 1]} : vector<1x128xf32> to vector<1x32xf32>
    %54 = vector.extract_strided_slice %51 {offsets = [0, 32], sizes = [1, 32], strides = [1, 1]} : vector<1x128xf32> to vector<1x32xf32>
    %55 = vector.extract_strided_slice %51 {offsets = [0, 64], sizes = [1, 32], strides = [1, 1]} : vector<1x128xf32> to vector<1x32xf32>
    %56 = vector.extract_strided_slice %52 {offsets = [0, 96], sizes = [1, 32], strides = [1, 1]} : vector<1x128xf32> to vector<1x32xf32>
    %57 = arith.mulf %54, %34 : vector<1x32xf32>
    %58 = arith.mulf %53, %56 : vector<1x32xf32>
    %59 = arith.addf %57, %58 : vector<1x32xf32>
    %60 = math.tanh %59 : vector<1x32xf32>
    %61 = arith.mulf %55, %60 : vector<1x32xf32>
    %62 = vector.broadcast %61 : vector<1x32xf32> to vector<32x32xf32>
    %63 = arith.mulf %62, %13 : vector<32x32xf32>
    %cst_14 = arith.constant dense<0.000000e+00> : vector<32xf32>
    %64 = vector.multi_reduction <add>, %63, %cst_14 [1] : vector<32x32xf32> to vector<32xf32>
    %65 = vector.shape_cast %64 : vector<32xf32> to vector<32x1xf32>
    %66 = vector.broadcast %65 : vector<32x1xf32> to vector<32x128xf32>
    %67 = arith.mulf %66, %1 : vector<32x128xf32>
    %cst_15 = arith.constant dense<0.000000e+00> : vector<128xf32>
    %68 = vector.multi_reduction <add>, %67, %cst_15 [0] : vector<32x128xf32> to vector<128xf32>
    %69 = vector.shape_cast %68 : vector<128xf32> to vector<1x128xf32>
    %70 = vector.extract_strided_slice %8 {offsets = [2, 0], sizes = [1, 128], strides = [1, 1]} : vector<8x128xf32> to vector<1x128xf32>
    %71 = arith.addf %70, %69 : vector<1x128xf32>
    %72 = arith.negf %71 : vector<1x128xf32>
    %73 = math.exp %72 : vector<1x128xf32>
    %cst_16 = arith.constant 1.000000e+00 : f32
    %74 = vector.broadcast %cst_16 : f32 to vector<1x128xf32>
    %75 = arith.addf %74, %73 : vector<1x128xf32>
    %76 = arith.divf %74, %75 : vector<1x128xf32>
    %77 = math.tanh %71 : vector<1x128xf32>
    %78 = vector.extract_strided_slice %76 {offsets = [0, 0], sizes = [1, 32], strides = [1, 1]} : vector<1x128xf32> to vector<1x32xf32>
    %79 = vector.extract_strided_slice %76 {offsets = [0, 32], sizes = [1, 32], strides = [1, 1]} : vector<1x128xf32> to vector<1x32xf32>
    %80 = vector.extract_strided_slice %76 {offsets = [0, 64], sizes = [1, 32], strides = [1, 1]} : vector<1x128xf32> to vector<1x32xf32>
    %81 = vector.extract_strided_slice %77 {offsets = [0, 96], sizes = [1, 32], strides = [1, 1]} : vector<1x128xf32> to vector<1x32xf32>
    %82 = arith.mulf %79, %59 : vector<1x32xf32>
    %83 = arith.mulf %78, %81 : vector<1x32xf32>
    %84 = arith.addf %82, %83 : vector<1x32xf32>
    %85 = math.tanh %84 : vector<1x32xf32>
    %86 = arith.mulf %80, %85 : vector<1x32xf32>
    %87 = vector.broadcast %86 : vector<1x32xf32> to vector<32x32xf32>
    %88 = arith.mulf %87, %13 : vector<32x32xf32>
    %cst_17 = arith.constant dense<0.000000e+00> : vector<32xf32>
    %89 = vector.multi_reduction <add>, %88, %cst_17 [1] : vector<32x32xf32> to vector<32xf32>
    %90 = vector.shape_cast %89 : vector<32xf32> to vector<32x1xf32>
    %91 = vector.broadcast %90 : vector<32x1xf32> to vector<32x128xf32>
    %92 = arith.mulf %91, %1 : vector<32x128xf32>
    %cst_18 = arith.constant dense<0.000000e+00> : vector<128xf32>
    %93 = vector.multi_reduction <add>, %92, %cst_18 [0] : vector<32x128xf32> to vector<128xf32>
    %94 = vector.shape_cast %93 : vector<128xf32> to vector<1x128xf32>
    %95 = vector.extract_strided_slice %8 {offsets = [3, 0], sizes = [1, 128], strides = [1, 1]} : vector<8x128xf32> to vector<1x128xf32>
    %96 = arith.addf %95, %94 : vector<1x128xf32>
    %97 = arith.negf %96 : vector<1x128xf32>
    %98 = math.exp %97 : vector<1x128xf32>
    %cst_19 = arith.constant 1.000000e+00 : f32
    %99 = vector.broadcast %cst_19 : f32 to vector<1x128xf32>
    %100 = arith.addf %99, %98 : vector<1x128xf32>
    %101 = arith.divf %99, %100 : vector<1x128xf32>
    %102 = math.tanh %96 : vector<1x128xf32>
    %103 = vector.extract_strided_slice %101 {offsets = [0, 0], sizes = [1, 32], strides = [1, 1]} : vector<1x128xf32> to vector<1x32xf32>
    %104 = vector.extract_strided_slice %101 {offsets = [0, 32], sizes = [1, 32], strides = [1, 1]} : vector<1x128xf32> to vector<1x32xf32>
    %105 = vector.extract_strided_slice %101 {offsets = [0, 64], sizes = [1, 32], strides = [1, 1]} : vector<1x128xf32> to vector<1x32xf32>
    %106 = vector.extract_strided_slice %102 {offsets = [0, 96], sizes = [1, 32], strides = [1, 1]} : vector<1x128xf32> to vector<1x32xf32>
    %107 = arith.mulf %104, %84 : vector<1x32xf32>
    %108 = arith.mulf %103, %106 : vector<1x32xf32>
    %109 = arith.addf %107, %108 : vector<1x32xf32>
    %110 = math.tanh %109 : vector<1x32xf32>
    %111 = arith.mulf %105, %110 : vector<1x32xf32>
    %112 = vector.broadcast %111 : vector<1x32xf32> to vector<32x32xf32>
    %113 = arith.mulf %112, %13 : vector<32x32xf32>
    %cst_20 = arith.constant dense<0.000000e+00> : vector<32xf32>
    %114 = vector.multi_reduction <add>, %113, %cst_20 [1] : vector<32x32xf32> to vector<32xf32>
    %115 = vector.shape_cast %114 : vector<32xf32> to vector<32x1xf32>
    %116 = vector.broadcast %115 : vector<32x1xf32> to vector<32x128xf32>
    %117 = arith.mulf %116, %1 : vector<32x128xf32>
    %cst_21 = arith.constant dense<0.000000e+00> : vector<128xf32>
    %118 = vector.multi_reduction <add>, %117, %cst_21 [0] : vector<32x128xf32> to vector<128xf32>
    %119 = vector.shape_cast %118 : vector<128xf32> to vector<1x128xf32>
    %120 = vector.extract_strided_slice %8 {offsets = [4, 0], sizes = [1, 128], strides = [1, 1]} : vector<8x128xf32> to vector<1x128xf32>
    %121 = arith.addf %120, %119 : vector<1x128xf32>
    %122 = arith.negf %121 : vector<1x128xf32>
    %123 = math.exp %122 : vector<1x128xf32>
    %cst_22 = arith.constant 1.000000e+00 : f32
    %124 = vector.broadcast %cst_22 : f32 to vector<1x128xf32>
    %125 = arith.addf %124, %123 : vector<1x128xf32>
    %126 = arith.divf %124, %125 : vector<1x128xf32>
    %127 = math.tanh %121 : vector<1x128xf32>
    %128 = vector.extract_strided_slice %126 {offsets = [0, 0], sizes = [1, 32], strides = [1, 1]} : vector<1x128xf32> to vector<1x32xf32>
    %129 = vector.extract_strided_slice %126 {offsets = [0, 32], sizes = [1, 32], strides = [1, 1]} : vector<1x128xf32> to vector<1x32xf32>
    %130 = vector.extract_strided_slice %126 {offsets = [0, 64], sizes = [1, 32], strides = [1, 1]} : vector<1x128xf32> to vector<1x32xf32>
    %131 = vector.extract_strided_slice %127 {offsets = [0, 96], sizes = [1, 32], strides = [1, 1]} : vector<1x128xf32> to vector<1x32xf32>
    %132 = arith.mulf %129, %109 : vector<1x32xf32>
    %133 = arith.mulf %128, %131 : vector<1x32xf32>
    %134 = arith.addf %132, %133 : vector<1x32xf32>
    %135 = math.tanh %134 : vector<1x32xf32>
    %136 = arith.mulf %130, %135 : vector<1x32xf32>
    %137 = vector.broadcast %136 : vector<1x32xf32> to vector<32x32xf32>
    %138 = arith.mulf %137, %13 : vector<32x32xf32>
    %cst_23 = arith.constant dense<0.000000e+00> : vector<32xf32>
    %139 = vector.multi_reduction <add>, %138, %cst_23 [1] : vector<32x32xf32> to vector<32xf32>
    %140 = vector.shape_cast %139 : vector<32xf32> to vector<32x1xf32>
    %141 = vector.broadcast %140 : vector<32x1xf32> to vector<32x128xf32>
    %142 = arith.mulf %141, %1 : vector<32x128xf32>
    %cst_24 = arith.constant dense<0.000000e+00> : vector<128xf32>
    %143 = vector.multi_reduction <add>, %142, %cst_24 [0] : vector<32x128xf32> to vector<128xf32>
    %144 = vector.shape_cast %143 : vector<128xf32> to vector<1x128xf32>
    %145 = vector.extract_strided_slice %8 {offsets = [5, 0], sizes = [1, 128], strides = [1, 1]} : vector<8x128xf32> to vector<1x128xf32>
    %146 = arith.addf %145, %144 : vector<1x128xf32>
    %147 = arith.negf %146 : vector<1x128xf32>
    %148 = math.exp %147 : vector<1x128xf32>
    %cst_25 = arith.constant 1.000000e+00 : f32
    %149 = vector.broadcast %cst_25 : f32 to vector<1x128xf32>
    %150 = arith.addf %149, %148 : vector<1x128xf32>
    %151 = arith.divf %149, %150 : vector<1x128xf32>
    %152 = math.tanh %146 : vector<1x128xf32>
    %153 = vector.extract_strided_slice %151 {offsets = [0, 0], sizes = [1, 32], strides = [1, 1]} : vector<1x128xf32> to vector<1x32xf32>
    %154 = vector.extract_strided_slice %151 {offsets = [0, 32], sizes = [1, 32], strides = [1, 1]} : vector<1x128xf32> to vector<1x32xf32>
    %155 = vector.extract_strided_slice %151 {offsets = [0, 64], sizes = [1, 32], strides = [1, 1]} : vector<1x128xf32> to vector<1x32xf32>
    %156 = vector.extract_strided_slice %152 {offsets = [0, 96], sizes = [1, 32], strides = [1, 1]} : vector<1x128xf32> to vector<1x32xf32>
    %157 = arith.mulf %154, %134 : vector<1x32xf32>
    %158 = arith.mulf %153, %156 : vector<1x32xf32>
    %159 = arith.addf %157, %158 : vector<1x32xf32>
    %160 = math.tanh %159 : vector<1x32xf32>
    %161 = arith.mulf %155, %160 : vector<1x32xf32>
    %162 = vector.broadcast %161 : vector<1x32xf32> to vector<32x32xf32>
    %163 = arith.mulf %162, %13 : vector<32x32xf32>
    %cst_26 = arith.constant dense<0.000000e+00> : vector<32xf32>
    %164 = vector.multi_reduction <add>, %163, %cst_26 [1] : vector<32x32xf32> to vector<32xf32>
    %165 = vector.shape_cast %164 : vector<32xf32> to vector<32x1xf32>
    %166 = vector.broadcast %165 : vector<32x1xf32> to vector<32x128xf32>
    %167 = arith.mulf %166, %1 : vector<32x128xf32>
    %cst_27 = arith.constant dense<0.000000e+00> : vector<128xf32>
    %168 = vector.multi_reduction <add>, %167, %cst_27 [0] : vector<32x128xf32> to vector<128xf32>
    %169 = vector.shape_cast %168 : vector<128xf32> to vector<1x128xf32>
    %170 = vector.extract_strided_slice %8 {offsets = [6, 0], sizes = [1, 128], strides = [1, 1]} : vector<8x128xf32> to vector<1x128xf32>
    %171 = arith.addf %170, %169 : vector<1x128xf32>
    %172 = arith.negf %171 : vector<1x128xf32>
    %173 = math.exp %172 : vector<1x128xf32>
    %cst_28 = arith.constant 1.000000e+00 : f32
    %174 = vector.broadcast %cst_28 : f32 to vector<1x128xf32>
    %175 = arith.addf %174, %173 : vector<1x128xf32>
    %176 = arith.divf %174, %175 : vector<1x128xf32>
    %177 = math.tanh %171 : vector<1x128xf32>
    %178 = vector.extract_strided_slice %176 {offsets = [0, 0], sizes = [1, 32], strides = [1, 1]} : vector<1x128xf32> to vector<1x32xf32>
    %179 = vector.extract_strided_slice %176 {offsets = [0, 32], sizes = [1, 32], strides = [1, 1]} : vector<1x128xf32> to vector<1x32xf32>
    %180 = vector.extract_strided_slice %176 {offsets = [0, 64], sizes = [1, 32], strides = [1, 1]} : vector<1x128xf32> to vector<1x32xf32>
    %181 = vector.extract_strided_slice %177 {offsets = [0, 96], sizes = [1, 32], strides = [1, 1]} : vector<1x128xf32> to vector<1x32xf32>
    %182 = arith.mulf %179, %159 : vector<1x32xf32>
    %183 = arith.mulf %178, %181 : vector<1x32xf32>
    %184 = arith.addf %182, %183 : vector<1x32xf32>
    %185 = math.tanh %184 : vector<1x32xf32>
    %186 = arith.mulf %180, %185 : vector<1x32xf32>
    %187 = vector.broadcast %186 : vector<1x32xf32> to vector<32x32xf32>
    %188 = arith.mulf %187, %13 : vector<32x32xf32>
    %cst_29 = arith.constant dense<0.000000e+00> : vector<32xf32>
    %189 = vector.multi_reduction <add>, %188, %cst_29 [1] : vector<32x32xf32> to vector<32xf32>
    %190 = vector.shape_cast %189 : vector<32xf32> to vector<32x1xf32>
    %191 = vector.broadcast %190 : vector<32x1xf32> to vector<32x128xf32>
    %192 = arith.mulf %191, %1 : vector<32x128xf32>
    %cst_30 = arith.constant dense<0.000000e+00> : vector<128xf32>
    %193 = vector.multi_reduction <add>, %192, %cst_30 [0] : vector<32x128xf32> to vector<128xf32>
    %194 = vector.shape_cast %193 : vector<128xf32> to vector<1x128xf32>
    %195 = vector.extract_strided_slice %8 {offsets = [7, 0], sizes = [1, 128], strides = [1, 1]} : vector<8x128xf32> to vector<1x128xf32>
    %196 = arith.addf %195, %194 : vector<1x128xf32>
    %197 = arith.negf %196 : vector<1x128xf32>
    %198 = math.exp %197 : vector<1x128xf32>
    %cst_31 = arith.constant 1.000000e+00 : f32
    %199 = vector.broadcast %cst_31 : f32 to vector<1x128xf32>
    %200 = arith.addf %199, %198 : vector<1x128xf32>
    %201 = arith.divf %199, %200 : vector<1x128xf32>
    %202 = math.tanh %196 : vector<1x128xf32>
    %203 = vector.extract_strided_slice %201 {offsets = [0, 0], sizes = [1, 32], strides = [1, 1]} : vector<1x128xf32> to vector<1x32xf32>
    %204 = vector.extract_strided_slice %201 {offsets = [0, 32], sizes = [1, 32], strides = [1, 1]} : vector<1x128xf32> to vector<1x32xf32>
    %205 = vector.extract_strided_slice %201 {offsets = [0, 64], sizes = [1, 32], strides = [1, 1]} : vector<1x128xf32> to vector<1x32xf32>
    %206 = vector.extract_strided_slice %202 {offsets = [0, 96], sizes = [1, 32], strides = [1, 1]} : vector<1x128xf32> to vector<1x32xf32>
    %207 = arith.mulf %204, %184 : vector<1x32xf32>
    %208 = arith.mulf %203, %206 : vector<1x32xf32>
    %209 = arith.addf %207, %208 : vector<1x32xf32>
    %210 = math.tanh %209 : vector<1x32xf32>
    %211 = arith.mulf %205, %210 : vector<1x32xf32>
    %212 = arith.mulf %211, %3 : vector<1x32xf32>
    %cst_32 = arith.constant dense<0.000000e+00> : vector<1xf32>
    %213 = vector.multi_reduction <add>, %212, %cst_32 [1] : vector<1x32xf32> to vector<1xf32>
    %214 = vector.shape_cast %213 : vector<1xf32> to vector<1x1xf32>
    %215 = arith.addf %214, %4 : vector<1x1xf32>
    %c0_33 = arith.constant 0 : index
    %c0_34 = arith.constant 0 : index
    %216 = vector.load %arg2[%c0_33, %c0_34] : memref<1x1xf32, #tpu.memory_space<vmem>>, vector<1x1xf32>
    tpu.vector_store %arg2[%c0_33, %c0_34], %215 {strides = array<i32>} : memref<1x1xf32, #tpu.memory_space<vmem>>, vector<1x1xf32>,
    return
  }
}

</mosaic_0001>

<bundles_post_ra>
// kernel: tpu_custom_call.1
= control target key start
LH: loop header
LB: loop body
LE: loop exit
PB: predicated region body
PF: predicated region fallthrough
CT: control target
= control target key end

     0   :  { %7 = vsyncpa [#allocation3], 0  ;;  %s1176_s0 = inlined_call_operand.vmem [shape: f32[8,4], index: 0, kind: input, shape index: {}]   ;;  %s1177_s1 = inlined_call_operand.hbm [shape: f32[48,128], index: 1, kind: input, shape index: {}]   ;;  %s1178_s2 = inlined_call_operand.hbm [shape: f32[1,1], index: 2, kind: output, shape index: {}]  }
   0x1   :  { %8 = vsyncpa [#allocation4], 0  ;;  %s15_s11 = sshll.u32 %s1177_s1, 4  ;;  %s951_s12 = smov [#allocation2]   ;;  %s16_s11 = int_to_ptr.hbm [resolvable:$true] %s15_s11 }
   0x2   :  { %s17_s13 = sshll.u32 %s951_s12, 4  ;;  %s952_s14 = smov 128   ;;  %s18_s13 = int_to_ptr.vmem [resolvable:$true] %s17_s13 }
   0x3   :  { %s953_s15 = smov 8  }
   0x4   :  { %23 = dma.hbm_to_vmem [thread:$0]  %s16_s11, 768, %s18_s13, [#allocation3], %s952_s14, %s952_s14, %s953_s15  }
   0x5   :  { %947 = dma.done.wait [#allocation3], 768  }
   0x6   :  { %948 = vsyncadd [#allocation3], 4294966528  ;;  %vm42_vm0 = vcmask 1043456   ;;  %vm38_vm1 = vcmask 31744   ;;  %v28_v0 = vld [vmem:[#allocation2] sm:$0xf]  ;;  %v66_v39 = vlaneseq }
   0x7   :  { %v36_v1 = vld [vmem:[%s1176_s0] sm:$0xff]  ;;  %799 = vmatpush.msk.msra.mxu0 %vm42_vm0, %v28_v0  ;;  %v979_v2 = vld [vmem:[#allocation2 + $0x8] sm:$0xff]  ;;  %v981_v3 = vld [vmem:[#allocation2 + $0x10] sm:$0xff]  ;;  %s954_s0 = smov 32   ;;  %v955_v44 = vmov 0.0   ;;  %s956_s1 = smov 64  }
   0x8   :  { %800 = vmatmul.msk.f32.vlgmr.msra.gmra.mxu0 %vm38_vm1, %v36_v1  ;;  %v85_v4 = vmul.f32 0.0, %v979_v2  ;;  %v86_v5 = vmul.f32 0.0, %v981_v3  ;;  %v985_v6 = vld [vmem:[#allocation2 + $0x18] sm:$0xff]  ;;  %v988_v9 = vld [vmem:[#allocation2 + $0x20] sm:$0xff]  ;;  %v830_v18 = vld [vmem:[#allocation2 + $0x28] ss:$0 sm:$0xff] }
   0x9   :  { %v87_v7 = vmul.f32 0.0, %v985_v6  ;;  %v88_v10 = vmul.f32 0.0, %v988_v9  ;;  %v67_v40 = vshrl.u32 %v66_v39, 7  ;;  %v72_v41 = vand.u32 127, %v66_v39  ;;  %s957_s18 = smov [#allocation5]   ;;  %s789_s22 = sshll.u32 %s1178_s2, 4  ;;  %s790_s22 = int_to_ptr.hbm [resolvable:$true] %s789_s22 }
   0xa   :  { %v89_v8 = vadd.f32 %v86_v5, %v85_v4  ;;  %vm173_vm10 = vcmask 261120   ;;  %s787_s19 = sshll.u32 %s957_s18, 4  ;;  %s788_s19 = int_to_ptr.vmem [resolvable:$true] %s787_s19 }
   0xb   :  { %v69_v42 = vadd.s32 16, %v67_v40  ;;  %v70_v43 = vadd.s32 24, %v67_v40  ;;  %v68_v51 = vadd.s32 8, %v67_v40  ;;  %vm73_vm8 = vcmp.eq.s32.totalorder %v67_v40, %v72_v41 }
   0xc   :  { %v90_v11 = vadd.f32 %v89_v8, %v87_v7  ;;  %v801_v53 = vsel %vm73_vm8, 1.0, %v955_v44 }
   0xd   :  { %vm75_vm6 = vcmp.eq.s32.totalorder %v69_v42, %v72_v41  ;;  %vm76_vm7 = vcmp.eq.s32.totalorder %v70_v43, %v72_v41  ;;  %vm74_vm9 = vcmp.eq.s32.totalorder %v68_v51, %v72_v41 }
   0xe   :  { %v91_v12 = vadd.f32 %v90_v11, %v88_v10  ;;  %v803_v45 = vsel %vm75_vm6, 1.0, %v955_v44  ;;  %v804_v46 = vsel %vm76_vm7, 1.0, %v955_v44  ;;  %v802_v54 = vsel %vm74_vm9, 1.0, %v955_v44 }
   0xf   :  { %v825_v47 = vpack.i.bf16 %v804_v46, %v803_v45  ;;  %v820_v55 = vpack.i.bf16 %v802_v54, %v801_v53 }
  0x10   :  { %v92_v13 = vrot.slane %v91_v12, 4 }
  0x11   :  { %826 = vrot.lane.b32.xlu2 %v825_v47, %s956_s1 }
  0x12   :  { %v93_v14 = vadd.f32 %v92_v13, %v91_v12 }
  0x14   :  { %v94_v15 = vrot.slane %v93_v14, 2 }
  0x16   :  { %v95_v16 = vadd.f32 %v94_v15, %v93_v14 }
  0x18   :  { %v96_v17 = vrot.slane %v95_v16, 1 }
  0x1a   :  { %v97_v19 = vadd.f32 %v96_v17, %v95_v16 }
  0x6b   :  { %v827_v56 = vpop.permute.xlu2 %826 }
  0x6c   :  { %v1002_v59 = vunpack.i.l.bf16 %v827_v56  ;;  %v1014_v5 = vunpack.i.h.bf16 %v827_v56 }
  0x85   :  { %v63_v20 = vpop.f32.mrf.mxu0 }
  0x86   :  { %v991_v21 = vadd.f32 %v830_v18, %v63_v20 }
  0x88   :  { %v98_v22 = vadd.f32 %v97_v19, %v991_v21 }
  0x8a   :  { %831 = vtanh.f32 %v98_v22  ;;  %v805_v24 = vmul.f32 -1.442695, %v98_v22 }
  0x8c   :  { %833 = vpow2.f32 %v805_v24 }
  0x90   :  { %v832_v23 = vpop.eup %831 }
  0x91   :  { %121 = vrot.lane.b32.xlu0 %v832_v23, %s954_s0 }
  0x92   :  { %v834_v25 = vpop.eup %833 }
  0x93   :  { %v102_v26 = vadd.f32 1.0, %v834_v25 }
  0x95   :  { %835 = vrcp.f32 %v102_v26  ;;  %v114_v32 = vand.u32 2147483648, %v102_v26  ;;  %vm108_vm3 = vweird.f32 %v102_v26  ;;  %v112_v33 = vand.u32 2147483647, %v102_v26 }
  0x97   :  { %v115_v35 = vor.u32 1.1754944e-38, %v114_v32  ;;  %vm113_vm5 = vcmp.eq.f32.partialorder %v112_v33, 8.507059e+37 }
  0x9b   :  { %v836_v27 = vpop.eup %835 }
  0x9c   :  { %v104_v28 = vmul.f32 %v836_v27, %v102_v26  ;;  %vm109_vm2 = vweird.f32 %v836_v27 }
  0x9d   :  { %vm110_vm4 = vmor %vm108_vm3, %vm109_vm2 }
  0x9e   :  { %v105_v29 = vsub.f32 1.0, %v104_v28 }
  0xa0   :  { %v106_v30 = vmul.f32 %v836_v27, %v105_v29 }
  0xa2   :  { %v107_v31 = vadd.f32 %v836_v27, %v106_v30 }
  0xa4   :  { %v111_v34 = vsel %vm110_vm4, %v836_v27, %v107_v31 }
  0xa5   :  { %v116_v37 = vsel %vm113_vm5, %v115_v35, %v111_v34 }
  0xa6   :  { %v119_v48 = vmul.f32 0.0, %v116_v37 }
 0x103   :  { %v122_v36 = vpop.permute.xlu0 %121 }
 0x104   :  { %v124_v38 = vmul.f32 %v122_v36, %v116_v37 }
 0x106   :  { %126 = vrot.lane.b32.xlu0 %v124_v38, %s954_s0 }
 0x178   :  { %v127_v49 = vpop.permute.xlu0 %126 }
 0x179   :  { %v997_v50 = vadd.f32 %v127_v49, %v119_v48 }
 0x17b   :  { %837 = vtanh.f32 %v997_v50  ;;  %v221_v53 = vrot.slane %v997_v50, 7 }
 0x181   :  { %v838_v52 = vpop.eup %837 }
 0x182   :  { %132 = vrot.lane.b32.xlu1 %v838_v52, %s954_s0 }
 0x18a   :  { %821 = vrot.lane.b32.xlu1 %v820_v55, %s956_s1 }
 0x1f4   :  { %v133_v57 = vpop.permute.xlu1 %132 }
 0x1f5   :  { %v135_v58 = vmul.f32 %v133_v57, %v116_v37 }
 0x1f7   :  { %v136_v60 = vperm.slane %v135_v58, 0 }
 0x1f9   :  { %v155_v61 = vmul.f32 %v1002_v59, %v136_v60  ;;  %v156_v7 = vmul.f32 %v1014_v5, %v136_v60 }
 0x1fb   :  { %165 = vrot.lane.b32.xlu1 %v155_v61, %s956_s1 }
 0x1fc   :  { %v822_v62 = vpop.permute.xlu1 %821 }
 0x1fd   :  { %v1006_v63 = vunpack.i.h.bf16 %v822_v62  ;;  %v1008_v0 = vunpack.i.l.bf16 %v822_v62 }
 0x1ff   :  { %v154_v1 = vmul.f32 %v1006_v63, %v136_v60  ;;  %v153_v4 = vmul.f32 %v1008_v0, %v136_v60 }
 0x201   :  { %163 = vrot.lane.b32.xlu0 %v154_v1, %s956_s1  ;;  %161 = vrot.lane.b32.xlu2 %v153_v4, %s956_s1 }
 0x209   :  { %167 = vrot.lane.b32.xlu2 %v156_v7, %s956_s1 }
 0x25b   :  { %v162_v8 = vpop.permute.xlu2 %161 }
 0x25c   :  { %v174_v10 = vsel %vm173_vm10, %v162_v8, 0.0 }
 0x25d   :  { %175 = vadd.xlane.f32.xlu0 %v174_v10 }
 0x263   :  { %v168_v13 = vpop.permute.xlu2 %167 }
 0x264   :  { %v183_v16 = vsel %vm173_vm10, %v168_v13, 0.0 }
 0x26d   :  { %v166_v11 = vpop.permute.xlu1 %165 }
 0x26e   :  { %v180_v12 = vsel %vm173_vm10, %v166_v11, 0.0 }
 0x26f   :  { %181 = vadd.xlane.f32.xlu2 %v180_v12 }
 0x273   :  { %v164_v14 = vpop.permute.xlu0 %163 }
 0x274   :  { %v177_v15 = vsel %vm173_vm10, %v164_v14, 0.0 }
 0x275   :  { %178 = vadd.xlane.f32.xlu1 %v177_v15 }
 0x277   :  { %184 = vadd.xlane.f32.xlu2 %v183_v16 }
 0x2d0   :  { %v176_v18 = vpop.xlane.xlu0 %175 }
 0x2d1   :  { %v186_v20 = vmul.f32 %v176_v18, %v979_v2 }
 0x2e2   :  { %v182_v17 = vpop.xlane.xlu2 %181 }
 0x2e3   :  { %v188_v24 = vmul.f32 %v182_v17, %v985_v6 }
 0x2e8   :  { %v179_v19 = vpop.xlane.xlu1 %178 }
 0x2e9   :  { %v187_v22 = vmul.f32 %v179_v19, %v981_v3 }
 0x2ea   :  { %v185_v23 = vpop.xlane.xlu2 %184 }
 0x2eb   :  { %v190_v25 = vadd.f32 %v187_v22, %v186_v20  ;;  %v189_v27 = vmul.f32 %v185_v23, %v988_v9 }
 0x2ed   :  { %v191_v26 = vadd.f32 %v190_v25, %v188_v24 }
 0x2ef   :  { %v192_v28 = vadd.f32 %v191_v26, %v189_v27 }
 0x2f1   :  { %v193_v29 = vrot.slane %v192_v28, 4 }
 0x2f3   :  { %v194_v30 = vadd.f32 %v193_v29, %v192_v28 }
 0x2f5   :  { %v195_v31 = vrot.slane %v194_v30, 2 }
 0x2f7   :  { %v196_v32 = vadd.f32 %v195_v31, %v194_v30 }
 0x2f9   :  { %v197_v33 = vrot.slane %v196_v32, 1 }
 0x2fb   :  { %v198_v34 = vadd.f32 %v197_v33, %v196_v32 }
 0x2fd   :  { %v199_v35 = vadd.f32 %v198_v34, %v991_v21 }
 0x2ff   :  { %839 = vtanh.f32 %v199_v35  ;;  %v806_v37 = vmul.f32 -1.442695, %v199_v35 }
 0x301   :  { %841 = vpow2.f32 %v806_v37 }
 0x305   :  { %v840_v36 = vpop.eup %839 }
 0x306   :  { %225 = vrot.lane.b32.xlu0 %v840_v36, %s954_s0 }
 0x307   :  { %v842_v38 = vpop.eup %841 }
 0x308   :  { %v203_v39 = vadd.f32 1.0, %v842_v38 }
 0x30a   :  { %843 = vrcp.f32 %v203_v39  ;;  %v215_v45 = vand.u32 2147483648, %v203_v39  ;;  %vm209_vm12 = vweird.f32 %v203_v39  ;;  %v213_v46 = vand.u32 2147483647, %v203_v39 }
 0x30c   :  { %v216_v48 = vor.u32 1.1754944e-38, %v215_v45  ;;  %vm214_vm14 = vcmp.eq.f32.partialorder %v213_v46, 8.507059e+37 }
 0x310   :  { %v844_v40 = vpop.eup %843 }
 0x311   :  { %v205_v41 = vmul.f32 %v844_v40, %v203_v39  ;;  %vm210_vm11 = vweird.f32 %v844_v40 }
 0x312   :  { %vm211_vm13 = vmor %vm209_vm12, %vm210_vm11 }
 0x313   :  { %v206_v42 = vsub.f32 1.0, %v205_v41 }
 0x315   :  { %v207_v43 = vmul.f32 %v844_v40, %v206_v42 }
 0x317   :  { %v208_v44 = vadd.f32 %v844_v40, %v207_v43 }
 0x319   :  { %v212_v47 = vsel %vm211_vm13, %v844_v40, %v208_v44 }
 0x31a   :  { %v217_v51 = vsel %vm214_vm14, %v216_v48, %v212_v47 }
 0x31b   :  { %v223_v54 = vmul.f32 %v221_v53, %v217_v51 }
 0x378   :  { %v226_v49 = vpop.permute.xlu0 %225 }
 0x379   :  { %v228_v52 = vmul.f32 %v226_v49, %v217_v51 }
 0x37b   :  { %230 = vrot.lane.b32.xlu1 %v228_v52, %s954_s0 }
 0x3ed   :  { %v231_v55 = vpop.permute.xlu1 %230 }
 0x3ee   :  { %v1030_v56 = vadd.f32 %v231_v55, %v223_v54 }
 0x3f0   :  { %845 = vtanh.f32 %v1030_v56  ;;  %v308_v52 = vrot.slane %v1030_v56, 7 }
 0x3f6   :  { %v846_v57 = vpop.eup %845 }
 0x3f7   :  { %236 = vrot.lane.b32.xlu2 %v846_v57, %s954_s0 }
 0x451   :  { %v237_v58 = vpop.permute.xlu2 %236 }
 0x452   :  { %v239_v60 = vmul.f32 %v237_v58, %v217_v51 }
 0x454   :  { %v240_v61 = vperm.slane %v239_v60, 1 }
 0x456   :  { %v244_v62 = vmul.f32 %v1014_v5, %v240_v61  ;;  %v242_v1 = vmul.f32 %v1006_v63, %v240_v61  ;;  %v241_v4 = vmul.f32 %v1008_v0, %v240_v61  ;;  %v243_v50 = vmul.f32 %v1002_v59, %v240_v61 }
 0x458   :  { %255 = vrot.lane.b32.xlu2 %v244_v62, %s956_s1  ;;  %251 = vrot.lane.b32.xlu1 %v242_v1, %s956_s1 }
 0x459   :  { %249 = vrot.lane.b32.xlu0 %v241_v4, %s956_s1 }
 0x461   :  { %253 = vrot.lane.b32.xlu0 %v243_v50, %s956_s1 }
 0x4b2   :  { %v256_v12 = vpop.permute.xlu2 %255 }
 0x4b3   :  { %v270_v14 = vsel %vm173_vm10, %v256_v12, 0.0 }
 0x4ca   :  { %v252_v7 = vpop.permute.xlu1 %251 }
 0x4cb   :  { %v250_v8 = vpop.permute.xlu0 %249  ;;  %v264_v10 = vsel %vm173_vm10, %v252_v7, 0.0 }
 0x4cc   :  { %265 = vadd.xlane.f32.xlu0 %v264_v10  ;;  %v261_v11 = vsel %vm173_vm10, %v250_v8, 0.0 }
 0x4cd   :  { %262 = vadd.xlane.f32.xlu1 %v261_v11 }
 0x4d3   :  { %v254_v13 = vpop.permute.xlu0 %253 }
 0x4d4   :  { %v267_v15 = vsel %vm173_vm10, %v254_v13, 0.0 }
 0x4d5   :  { %271 = vadd.xlane.f32.xlu1 %v270_v14  ;;  %268 = vadd.xlane.f32.xlu2 %v267_v15 }
 0x53f   :  { %v266_v17 = vpop.xlane.xlu0 %265 }
 0x540   :  { %v263_v16 = vpop.xlane.xlu1 %262  ;;  %v274_v19 = vmul.f32 %v266_v17, %v981_v3 }
 0x541   :  { %v273_v18 = vmul.f32 %v263_v16, %v979_v2 }
 0x543   :  { %v277_v23 = vadd.f32 %v274_v19, %v273_v18 }
 0x548   :  { %v272_v20 = vpop.xlane.xlu1 %271  ;;  %v269_v22 = vpop.xlane.xlu2 %268 }
 0x549   :  { %v275_v24 = vmul.f32 %v269_v22, %v985_v6  ;;  %v276_v25 = vmul.f32 %v272_v20, %v988_v9 }
 0x54b   :  { %v278_v26 = vadd.f32 %v277_v23, %v275_v24 }
 0x54d   :  { %v279_v27 = vadd.f32 %v278_v26, %v276_v25 }
 0x54f   :  { %v280_v28 = vrot.slane %v279_v27, 4 }
 0x551   :  { %v281_v29 = vadd.f32 %v280_v28, %v279_v27 }
 0x553   :  { %v282_v30 = vrot.slane %v281_v29, 2 }
 0x555   :  { %v283_v31 = vadd.f32 %v282_v30, %v281_v29 }
 0x557   :  { %v284_v32 = vrot.slane %v283_v31, 1 }
 0x559   :  { %v285_v33 = vadd.f32 %v284_v32, %v283_v31 }
 0x55b   :  { %v286_v34 = vadd.f32 %v285_v33, %v991_v21 }
 0x55d   :  { %847 = vtanh.f32 %v286_v34  ;;  %v807_v36 = vmul.f32 -1.442695, %v286_v34 }
 0x55f   :  { %849 = vpow2.f32 %v807_v36 }
 0x563   :  { %v848_v35 = vpop.eup %847 }
 0x564   :  { %312 = vrot.lane.b32.xlu0 %v848_v35, %s954_s0 }
 0x565   :  { %v850_v37 = vpop.eup %849 }
 0x566   :  { %v290_v38 = vadd.f32 1.0, %v850_v37 }
 0x568   :  { %851 = vrcp.f32 %v290_v38  ;;  %v302_v44 = vand.u32 2147483648, %v290_v38  ;;  %vm296_vm0 = vweird.f32 %v290_v38  ;;  %v300_v45 = vand.u32 2147483647, %v290_v38 }
 0x56a   :  { %v303_v47 = vor.u32 1.1754944e-38, %v302_v44  ;;  %vm301_vm2 = vcmp.eq.f32.partialorder %v300_v45, 8.507059e+37 }
 0x56e   :  { %v852_v39 = vpop.eup %851 }
 0x56f   :  { %v292_v40 = vmul.f32 %v852_v39, %v290_v38  ;;  %vm297_vm15 = vweird.f32 %v852_v39 }
 0x570   :  { %vm298_vm1 = vmor %vm296_vm0, %vm297_vm15 }
 0x571   :  { %v293_v41 = vsub.f32 1.0, %v292_v40 }
 0x573   :  { %v294_v42 = vmul.f32 %v852_v39, %v293_v41 }
 0x575   :  { %v295_v43 = vadd.f32 %v852_v39, %v294_v42 }
 0x577   :  { %v299_v46 = vsel %vm298_vm1, %v852_v39, %v295_v43 }
 0x578   :  { %v304_v49 = vsel %vm301_vm2, %v303_v47, %v299_v46 }
 0x579   :  { %v310_v53 = vmul.f32 %v308_v52, %v304_v49 }
 0x5d6   :  { %v313_v48 = vpop.permute.xlu0 %312 }
 0x5d7   :  { %v315_v51 = vmul.f32 %v313_v48, %v304_v49 }
 0x5d9   :  { %317 = vrot.lane.b32.xlu2 %v315_v51, %s954_s0 }
 0x633   :  { %v318_v54 = vpop.permute.xlu2 %317 }
 0x634   :  { %v1054_v55 = vadd.f32 %v318_v54, %v310_v53 }
 0x636   :  { %853 = vtanh.f32 %v1054_v55  ;;  %v395_v51 = vrot.slane %v1054_v55, 7 }
 0x63c   :  { %v854_v57 = vpop.eup %853 }
 0x63d   :  { %323 = vrot.lane.b32.xlu1 %v854_v57, %s954_s0 }
 0x6af   :  { %v324_v58 = vpop.permute.xlu1 %323 }
 0x6b0   :  { %v326_v60 = vmul.f32 %v324_v58, %v304_v49 }
 0x6b2   :  { %v327_v61 = vperm.slane %v326_v60, 2 }
 0x6b4   :  { %v331_v62 = vmul.f32 %v1014_v5, %v327_v61  ;;  %v329_v1 = vmul.f32 %v1006_v63, %v327_v61  ;;  %v328_v4 = vmul.f32 %v1008_v0, %v327_v61  ;;  %v330_v56 = vmul.f32 %v1002_v59, %v327_v61 }
 0x6b6   :  { %342 = vrot.lane.b32.xlu1 %v331_v62, %s956_s1  ;;  %338 = vrot.lane.b32.xlu2 %v329_v1, %s956_s1 }
 0x6b7   :  { %336 = vrot.lane.b32.xlu0 %v328_v4, %s956_s1 }
 0x6bf   :  { %340 = vrot.lane.b32.xlu0 %v330_v56, %s956_s1 }
 0x710   :  { %v339_v50 = vpop.permute.xlu2 %338 }
 0x711   :  { %v351_v7 = vsel %vm173_vm10, %v339_v50, 0.0 }
 0x712   :  { %352 = vadd.xlane.f32.xlu0 %v351_v7 }
 0x728   :  { %v343_v11 = vpop.permute.xlu1 %342 }
 0x729   :  { %v337_v8 = vpop.permute.xlu0 %336  ;;  %v357_v13 = vsel %vm173_vm10, %v343_v11, 0.0 }
 0x72a   :  { %v348_v10 = vsel %vm173_vm10, %v337_v8, 0.0 }
 0x72b   :  { %349 = vadd.xlane.f32.xlu2 %v348_v10 }
 0x731   :  { %v341_v12 = vpop.permute.xlu0 %340 }
 0x732   :  { %v354_v14 = vsel %vm173_vm10, %v341_v12, 0.0 }
 0x733   :  { %358 = vadd.xlane.f32.xlu2 %v357_v13  ;;  %355 = vadd.xlane.f32.xlu1 %v354_v14 }
 0x785   :  { %v353_v16 = vpop.xlane.xlu0 %352 }
 0x786   :  { %v361_v18 = vmul.f32 %v353_v16, %v981_v3 }
 0x79e   :  { %v350_v15 = vpop.xlane.xlu2 %349 }
 0x79f   :  { %v360_v17 = vmul.f32 %v350_v15, %v979_v2 }
 0x7a1   :  { %v364_v22 = vadd.f32 %v361_v18, %v360_v17 }
 0x7a6   :  { %v359_v19 = vpop.xlane.xlu2 %358  ;;  %v356_v20 = vpop.xlane.xlu1 %355 }
 0x7a7   :  { %v362_v23 = vmul.f32 %v356_v20, %v985_v6  ;;  %v363_v24 = vmul.f32 %v359_v19, %v988_v9 }
 0x7a9   :  { %v365_v25 = vadd.f32 %v364_v22, %v362_v23 }
 0x7ab   :  { %v366_v26 = vadd.f32 %v365_v25, %v363_v24 }
 0x7ad   :  { %v367_v27 = vrot.slane %v366_v26, 4 }
 0x7af   :  { %v368_v28 = vadd.f32 %v367_v27, %v366_v26 }
 0x7b1   :  { %v369_v29 = vrot.slane %v368_v28, 2 }
 0x7b3   :  { %v370_v30 = vadd.f32 %v369_v29, %v368_v28 }
 0x7b5   :  { %v371_v31 = vrot.slane %v370_v30, 1 }
 0x7b7   :  { %v372_v32 = vadd.f32 %v371_v31, %v370_v30 }
 0x7b9   :  { %v373_v33 = vadd.f32 %v372_v32, %v991_v21 }
 0x7bb   :  { %855 = vtanh.f32 %v373_v33  ;;  %v808_v35 = vmul.f32 -1.442695, %v373_v33 }
 0x7bd   :  { %857 = vpow2.f32 %v808_v35 }
 0x7c1   :  { %v856_v34 = vpop.eup %855 }
 0x7c2   :  { %399 = vrot.lane.b32.xlu0 %v856_v34, %s954_s0 }
 0x7c3   :  { %v858_v36 = vpop.eup %857 }
 0x7c4   :  { %v377_v37 = vadd.f32 1.0, %v858_v36 }
 0x7c6   :  { %859 = vrcp.f32 %v377_v37  ;;  %v389_v43 = vand.u32 2147483648, %v377_v37  ;;  %vm383_vm4 = vweird.f32 %v377_v37  ;;  %v387_v44 = vand.u32 2147483647, %v377_v37 }
 0x7c8   :  { %v390_v46 = vor.u32 1.1754944e-38, %v389_v43  ;;  %vm388_vm6 = vcmp.eq.f32.partialorder %v387_v44, 8.507059e+37 }
 0x7cc   :  { %v860_v38 = vpop.eup %859 }
 0x7cd   :  { %v379_v39 = vmul.f32 %v860_v38, %v377_v37  ;;  %vm384_vm3 = vweird.f32 %v860_v38 }
 0x7ce   :  { %vm385_vm5 = vmor %vm383_vm4, %vm384_vm3 }
 0x7cf   :  { %v380_v40 = vsub.f32 1.0, %v379_v39 }
 0x7d1   :  { %v381_v41 = vmul.f32 %v860_v38, %v380_v40 }
 0x7d3   :  { %v382_v42 = vadd.f32 %v860_v38, %v381_v41 }
 0x7d5   :  { %v386_v45 = vsel %vm385_vm5, %v860_v38, %v382_v42 }
 0x7d6   :  { %v391_v48 = vsel %vm388_vm6, %v390_v46, %v386_v45 }
 0x7d7   :  { %v397_v52 = vmul.f32 %v395_v51, %v391_v48 }
 0x834   :  { %v400_v47 = vpop.permute.xlu0 %399 }
 0x835   :  { %v402_v49 = vmul.f32 %v400_v47, %v391_v48 }
 0x837   :  { %404 = vrot.lane.b32.xlu1 %v402_v49, %s954_s0 }
 0x8a9   :  { %v405_v53 = vpop.permute.xlu1 %404 }
 0x8aa   :  { %v1078_v54 = vadd.f32 %v405_v53, %v397_v52 }
 0x8ac   :  { %861 = vtanh.f32 %v1078_v54  ;;  %v482_v49 = vrot.slane %v1078_v54, 7 }
 0x8b2   :  { %v862_v57 = vpop.eup %861 }
 0x8b3   :  { %410 = vrot.lane.b32.xlu2 %v862_v57, %s954_s0 }
 0x90d   :  { %v411_v58 = vpop.permute.xlu2 %410 }
 0x90e   :  { %v413_v60 = vmul.f32 %v411_v58, %v391_v48 }
 0x910   :  { %v414_v61 = vperm.slane %v413_v60, 3 }
 0x912   :  { %v418_v62 = vmul.f32 %v1014_v5, %v414_v61  ;;  %v416_v1 = vmul.f32 %v1006_v63, %v414_v61  ;;  %v415_v4 = vmul.f32 %v1008_v0, %v414_v61  ;;  %v417_v55 = vmul.f32 %v1002_v59, %v414_v61 }
 0x914   :  { %429 = vrot.lane.b32.xlu2 %v418_v62, %s956_s1  ;;  %425 = vrot.lane.b32.xlu1 %v416_v1, %s956_s1 }
 0x915   :  { %423 = vrot.lane.b32.xlu0 %v415_v4, %s956_s1 }
 0x91d   :  { %427 = vrot.lane.b32.xlu0 %v417_v55, %s956_s1 }
 0x96e   :  { %v430_v10 = vpop.permute.xlu2 %429 }
 0x96f   :  { %v444_v12 = vsel %vm173_vm10, %v430_v10, 0.0 }
 0x986   :  { %v426_v56 = vpop.permute.xlu1 %425 }
 0x987   :  { %v424_v50 = vpop.permute.xlu0 %423  ;;  %v438_v7 = vsel %vm173_vm10, %v426_v56, 0.0 }
 0x988   :  { %439 = vadd.xlane.f32.xlu0 %v438_v7  ;;  %v435_v8 = vsel %vm173_vm10, %v424_v50, 0.0 }
 0x989   :  { %436 = vadd.xlane.f32.xlu1 %v435_v8 }
 0x98f   :  { %v428_v11 = vpop.permute.xlu0 %427 }
 0x990   :  { %v441_v13 = vsel %vm173_vm10, %v428_v11, 0.0 }
 0x991   :  { %445 = vadd.xlane.f32.xlu1 %v444_v12  ;;  %442 = vadd.xlane.f32.xlu2 %v441_v13 }
 0x9fb   :  { %v440_v15 = vpop.xlane.xlu0 %439 }
 0x9fc   :  { %v437_v14 = vpop.xlane.xlu1 %436  ;;  %v448_v17 = vmul.f32 %v440_v15, %v981_v3 }
 0x9fd   :  { %v447_v16 = vmul.f32 %v437_v14, %v979_v2 }
 0x9ff   :  { %v451_v20 = vadd.f32 %v448_v17, %v447_v16 }
 0xa04   :  { %v446_v18 = vpop.xlane.xlu1 %445  ;;  %v443_v19 = vpop.xlane.xlu2 %442 }
 0xa05   :  { %v449_v22 = vmul.f32 %v443_v19, %v985_v6  ;;  %v450_v23 = vmul.f32 %v446_v18, %v988_v9 }
 0xa07   :  { %v452_v24 = vadd.f32 %v451_v20, %v449_v22 }
 0xa09   :  { %v453_v25 = vadd.f32 %v452_v24, %v450_v23 }
 0xa0b   :  { %v454_v26 = vrot.slane %v453_v25, 4 }
 0xa0d   :  { %v455_v27 = vadd.f32 %v454_v26, %v453_v25 }
 0xa0f   :  { %v456_v28 = vrot.slane %v455_v27, 2 }
 0xa11   :  { %v457_v29 = vadd.f32 %v456_v28, %v455_v27 }
 0xa13   :  { %v458_v30 = vrot.slane %v457_v29, 1 }
 0xa15   :  { %v459_v31 = vadd.f32 %v458_v30, %v457_v29 }
 0xa17   :  { %v460_v32 = vadd.f32 %v459_v31, %v991_v21 }
 0xa19   :  { %863 = vtanh.f32 %v460_v32  ;;  %v809_v34 = vmul.f32 -1.442695, %v460_v32 }
 0xa1b   :  { %865 = vpow2.f32 %v809_v34 }
 0xa1f   :  { %v864_v33 = vpop.eup %863 }
 0xa20   :  { %486 = vrot.lane.b32.xlu0 %v864_v33, %s954_s0 }
 0xa21   :  { %v866_v35 = vpop.eup %865 }
 0xa22   :  { %v464_v36 = vadd.f32 1.0, %v866_v35 }
 0xa24   :  { %867 = vrcp.f32 %v464_v36  ;;  %v476_v42 = vand.u32 2147483648, %v464_v36  ;;  %vm470_vm8 = vweird.f32 %v464_v36  ;;  %v474_v43 = vand.u32 2147483647, %v464_v36 }
 0xa26   :  { %v477_v45 = vor.u32 1.1754944e-38, %v476_v42  ;;  %vm475_vm11 = vcmp.eq.f32.partialorder %v474_v43, 8.507059e+37 }
 0xa2a   :  { %v868_v37 = vpop.eup %867 }
 0xa2b   :  { %v466_v38 = vmul.f32 %v868_v37, %v464_v36  ;;  %vm471_vm7 = vweird.f32 %v868_v37 }
 0xa2c   :  { %vm472_vm9 = vmor %vm470_vm8, %vm471_vm7  ;;  %vm772_vm7 = vcmask 261127   ;;  %vm780_vm8 = vcmask 7175  }
 0xa2d   :  { %v467_v39 = vsub.f32 1.0, %v466_v38 }
 0xa2f   :  { %v468_v40 = vmul.f32 %v868_v37, %v467_v39 }
 0xa31   :  { %v469_v41 = vadd.f32 %v868_v37, %v468_v40 }
 0xa33   :  { %v473_v44 = vsel %vm472_vm9, %v868_v37, %v469_v41 }
 0xa34   :  { %v478_v47 = vsel %vm475_vm11, %v477_v45, %v473_v44 }
 0xa35   :  { %v484_v51 = vmul.f32 %v482_v49, %v478_v47 }
 0xa92   :  { %v487_v46 = vpop.permute.xlu0 %486 }
 0xa93   :  { %v489_v48 = vmul.f32 %v487_v46, %v478_v47 }
 0xa95   :  { %491 = vrot.lane.b32.xlu2 %v489_v48, %s954_s0 }
 0xaef   :  { %v492_v52 = vpop.permute.xlu2 %491 }
 0xaf0   :  { %v1102_v53 = vadd.f32 %v492_v52, %v484_v51 }
 0xaf2   :  { %869 = vtanh.f32 %v1102_v53  ;;  %v569_v48 = vrot.slane %v1102_v53, 7 }
 0xaf8   :  { %v870_v57 = vpop.eup %869 }
 0xaf9   :  { %497 = vrot.lane.b32.xlu1 %v870_v57, %s954_s0 }
 0xb6b   :  { %v498_v58 = vpop.permute.xlu1 %497 }
 0xb6c   :  { %v500_v60 = vmul.f32 %v498_v58, %v478_v47 }
 0xb6e   :  { %v501_v61 = vperm.slane %v500_v60, 4 }
 0xb70   :  { %v505_v62 = vmul.f32 %v1014_v5, %v501_v61  ;;  %v503_v1 = vmul.f32 %v1006_v63, %v501_v61  ;;  %v502_v4 = vmul.f32 %v1008_v0, %v501_v61  ;;  %v504_v54 = vmul.f32 %v1002_v59, %v501_v61 }
 0xb72   :  { %516 = vrot.lane.b32.xlu1 %v505_v62, %s956_s1  ;;  %512 = vrot.lane.b32.xlu2 %v503_v1, %s956_s1 }
 0xb73   :  { %510 = vrot.lane.b32.xlu0 %v502_v4, %s956_s1 }
 0xb7b   :  { %514 = vrot.lane.b32.xlu0 %v504_v54, %s956_s1 }
 0xbcc   :  { %v513_v55 = vpop.permute.xlu2 %512 }
 0xbcd   :  { %v525_v56 = vsel %vm173_vm10, %v513_v55, 0.0 }
 0xbce   :  { %526 = vadd.xlane.f32.xlu0 %v525_v56 }
 0xbe4   :  { %v517_v8 = vpop.permute.xlu1 %516 }
 0xbe5   :  { %v511_v50 = vpop.permute.xlu0 %510  ;;  %v531_v11 = vsel %vm173_vm10, %v517_v8, 0.0 }
 0xbe6   :  { %v522_v7 = vsel %vm173_vm10, %v511_v50, 0.0 }
 0xbe7   :  { %523 = vadd.xlane.f32.xlu2 %v522_v7 }
 0xbed   :  { %v515_v10 = vpop.permute.xlu0 %514 }
 0xbee   :  { %v528_v12 = vsel %vm173_vm10, %v515_v10, 0.0 }
 0xbef   :  { %532 = vadd.xlane.f32.xlu2 %v531_v11  ;;  %529 = vadd.xlane.f32.xlu1 %v528_v12 }
 0xc41   :  { %v527_v14 = vpop.xlane.xlu0 %526 }
 0xc42   :  { %v535_v16 = vmul.f32 %v527_v14, %v981_v3 }
 0xc5a   :  { %v524_v13 = vpop.xlane.xlu2 %523 }
 0xc5b   :  { %v534_v15 = vmul.f32 %v524_v13, %v979_v2 }
 0xc5d   :  { %v538_v19 = vadd.f32 %v535_v16, %v534_v15 }
 0xc62   :  { %v533_v17 = vpop.xlane.xlu2 %532  ;;  %v530_v18 = vpop.xlane.xlu1 %529 }
 0xc63   :  { %v536_v20 = vmul.f32 %v530_v18, %v985_v6  ;;  %v537_v22 = vmul.f32 %v533_v17, %v988_v9 }
 0xc65   :  { %v539_v23 = vadd.f32 %v538_v19, %v536_v20 }
 0xc67   :  { %v540_v24 = vadd.f32 %v539_v23, %v537_v22 }
 0xc69   :  { %v541_v25 = vrot.slane %v540_v24, 4 }
 0xc6b   :  { %v542_v26 = vadd.f32 %v541_v25, %v540_v24 }
 0xc6d   :  { %v543_v27 = vrot.slane %v542_v26, 2 }
 0xc6f   :  { %v544_v28 = vadd.f32 %v543_v27, %v542_v26 }
 0xc71   :  { %v545_v29 = vrot.slane %v544_v28, 1 }
 0xc73   :  { %v546_v30 = vadd.f32 %v545_v29, %v544_v28 }
 0xc75   :  { %v547_v31 = vadd.f32 %v546_v30, %v991_v21 }
 0xc77   :  { %871 = vtanh.f32 %v547_v31  ;;  %v810_v33 = vmul.f32 -1.442695, %v547_v31 }
 0xc79   :  { %873 = vpow2.f32 %v810_v33 }
 0xc7d   :  { %v872_v32 = vpop.eup %871 }
 0xc7e   :  { %573 = vrot.lane.b32.xlu0 %v872_v32, %s954_s0 }
 0xc7f   :  { %v874_v34 = vpop.eup %873 }
 0xc80   :  { %v551_v35 = vadd.f32 1.0, %v874_v34 }
 0xc82   :  { %875 = vrcp.f32 %v551_v35  ;;  %v563_v41 = vand.u32 2147483648, %v551_v35  ;;  %vm557_vm13 = vweird.f32 %v551_v35  ;;  %v561_v42 = vand.u32 2147483647, %v551_v35 }
 0xc84   :  { %v564_v44 = vor.u32 1.1754944e-38, %v563_v41  ;;  %vm562_vm15 = vcmp.eq.f32.partialorder %v561_v42, 8.507059e+37 }
 0xc88   :  { %v876_v36 = vpop.eup %875 }
 0xc89   :  { %v553_v37 = vmul.f32 %v876_v36, %v551_v35  ;;  %vm558_vm12 = vweird.f32 %v876_v36 }
 0xc8a   :  { %vm559_vm14 = vmor %vm557_vm13, %vm558_vm12 }
 0xc8b   :  { %v554_v38 = vsub.f32 1.0, %v553_v37 }
 0xc8d   :  { %v555_v39 = vmul.f32 %v876_v36, %v554_v38 }
 0xc8f   :  { %v556_v40 = vadd.f32 %v876_v36, %v555_v39 }
 0xc91   :  { %v560_v43 = vsel %vm559_vm14, %v876_v36, %v556_v40 }
 0xc92   :  { %v565_v46 = vsel %vm562_vm15, %v564_v44, %v560_v43 }
 0xc93   :  { %v571_v49 = vmul.f32 %v569_v48, %v565_v46 }
 0xcf0   :  { %v574_v45 = vpop.permute.xlu0 %573 }
 0xcf1   :  { %v576_v47 = vmul.f32 %v574_v45, %v565_v46 }
 0xcf3   :  { %578 = vrot.lane.b32.xlu2 %v576_v47, %s954_s0 }
 0xd4d   :  { %v579_v51 = vpop.permute.xlu2 %578 }
 0xd4e   :  { %v1126_v52 = vadd.f32 %v579_v51, %v571_v49 }
 0xd50   :  { %877 = vtanh.f32 %v1126_v52  ;;  %v656_v43 = vrot.slane %v1126_v52, 7 }
 0xd56   :  { %v878_v57 = vpop.eup %877 }
 0xd57   :  { %584 = vrot.lane.b32.xlu1 %v878_v57, %s954_s0 }
 0xdc9   :  { %v585_v58 = vpop.permute.xlu1 %584 }
 0xdca   :  { %v587_v60 = vmul.f32 %v585_v58, %v565_v46 }
 0xdcc   :  { %v588_v61 = vperm.slane %v587_v60, 5 }
 0xdce   :  { %v592_v62 = vmul.f32 %v1014_v5, %v588_v61  ;;  %v590_v1 = vmul.f32 %v1006_v63, %v588_v61  ;;  %v589_v4 = vmul.f32 %v1008_v0, %v588_v61  ;;  %v591_v53 = vmul.f32 %v1002_v59, %v588_v61 }
 0xdd0   :  { %603 = vrot.lane.b32.xlu1 %v592_v62, %s956_s1  ;;  %599 = vrot.lane.b32.xlu2 %v590_v1, %s956_s1 }
 0xdd1   :  { %597 = vrot.lane.b32.xlu0 %v589_v4, %s956_s1 }
 0xdd9   :  { %601 = vrot.lane.b32.xlu0 %v591_v53, %s956_s1 }
 0xe2a   :  { %v600_v54 = vpop.permute.xlu2 %599 }
 0xe2b   :  { %v612_v55 = vsel %vm173_vm10, %v600_v54, 0.0 }
 0xe2c   :  { %613 = vadd.xlane.f32.xlu0 %v612_v55  ;;  %v895_v55 = vld [vmem:[#allocation2 + $0x8] sm:$0xff] }
 0xe42   :  { %v604_v7 = vpop.permute.xlu1 %603 }
 0xe43   :  { %v598_v56 = vpop.permute.xlu0 %597  ;;  %v618_v10 = vsel %vm173_vm10, %v604_v7, 0.0 }
 0xe44   :  { %v609_v50 = vsel %vm173_vm10, %v598_v56, 0.0 }
 0xe45   :  { %610 = vadd.xlane.f32.xlu2 %v609_v50  ;;  %v896_v50 = vld [vmem:[#allocation2 + $0x10] sm:$0xff] }
 0xe4b   :  { %v602_v8 = vpop.permute.xlu0 %601 }
 0xe4c   :  { %v615_v11 = vsel %vm173_vm10, %v602_v8, 0.0 }
 0xe4d   :  { %619 = vadd.xlane.f32.xlu2 %v618_v10  ;;  %616 = vadd.xlane.f32.xlu1 %v615_v11 }
 0xe9f   :  { %v614_v13 = vpop.xlane.xlu0 %613 }
 0xea0   :  { %v622_v15 = vmul.f32 %v614_v13, %v981_v3 }
 0xeb8   :  { %v611_v12 = vpop.xlane.xlu2 %610 }
 0xeb9   :  { %v621_v14 = vmul.f32 %v611_v12, %v979_v2  ;;  %v897_v12 = vld [vmem:[#allocation2 + $0x18] sm:$0xff] }
 0xebb   :  { %v625_v18 = vadd.f32 %v622_v15, %v621_v14  ;;  %v898_v14 = vld [vmem:[#allocation2 + $0x20] sm:$0xff] }
 0xec0   :  { %v620_v16 = vpop.xlane.xlu2 %619  ;;  %v617_v17 = vpop.xlane.xlu1 %616 }
 0xec1   :  { %v623_v19 = vmul.f32 %v617_v17, %v985_v6  ;;  %v624_v20 = vmul.f32 %v620_v16, %v988_v9 }
 0xec3   :  { %v626_v22 = vadd.f32 %v625_v18, %v623_v19 }
 0xec5   :  { %v627_v23 = vadd.f32 %v626_v22, %v624_v20 }
 0xec7   :  { %v628_v24 = vrot.slane %v627_v23, 4 }
 0xec9   :  { %v629_v25 = vadd.f32 %v628_v24, %v627_v23 }
 0xecb   :  { %v630_v26 = vrot.slane %v629_v25, 2 }
 0xecd   :  { %v631_v27 = vadd.f32 %v630_v26, %v629_v25 }
 0xecf   :  { %v632_v28 = vrot.slane %v631_v27, 1 }
 0xed1   :  { %v633_v29 = vadd.f32 %v632_v28, %v631_v27 }
 0xed3   :  { %v634_v30 = vadd.f32 %v633_v29, %v991_v21 }
 0xed5   :  { %879 = vtanh.f32 %v634_v30  ;;  %v811_v3 = vmul.f32 -1.442695, %v634_v30 }
 0xed7   :  { %881 = vpow2.f32 %v811_v3 }
 0xedb   :  { %v880_v2 = vpop.eup %879 }
 0xedc   :  { %660 = vrot.lane.b32.xlu0 %v880_v2, %s954_s0 }
 0xedd   :  { %v882_v31 = vpop.eup %881 }
 0xede   :  { %v638_v6 = vadd.f32 1.0, %v882_v31 }
 0xee0   :  { %883 = vrcp.f32 %v638_v6  ;;  %v650_v36 = vand.u32 2147483648, %v638_v6  ;;  %vm644_vm1 = vweird.f32 %v638_v6  ;;  %v648_v37 = vand.u32 2147483647, %v638_v6 }
 0xee2   :  { %v651_v39 = vor.u32 1.1754944e-38, %v650_v36  ;;  %vm649_vm3 = vcmp.eq.f32.partialorder %v648_v37, 8.507059e+37  ;;  %v34_v37 = vld [vmem:[#allocation2 + $0x29] sm:$0x1] }
 0xee6   :  { %v884_v9 = vpop.eup %883 }
 0xee7   :  { %v640_v32 = vmul.f32 %v884_v9, %v638_v6  ;;  %vm645_vm0 = vweird.f32 %v884_v9 }
 0xee8   :  { %vm646_vm2 = vmor %vm644_vm1, %vm645_vm0 }
 0xee9   :  { %v641_v33 = vsub.f32 1.0, %v640_v32 }
 0xeeb   :  { %v642_v34 = vmul.f32 %v884_v9, %v641_v33 }
 0xeed   :  { %v643_v35 = vadd.f32 %v884_v9, %v642_v34 }
 0xeef   :  { %v647_v38 = vsel %vm646_vm2, %v884_v9, %v643_v35 }
 0xef0   :  { %v652_v41 = vsel %vm649_vm3, %v651_v39, %v647_v38  ;;  %v763_v38 = vrot.slane %v34_v37, 1 }
 0xef1   :  { %v658_v44 = vmul.f32 %v656_v43, %v652_v41 }
 0xf4e   :  { %v661_v40 = vpop.permute.xlu0 %660 }
 0xf4f   :  { %v663_v42 = vmul.f32 %v661_v40, %v652_v41 }
 0xf51   :  { %665 = vrot.lane.b32.xlu1 %v663_v42, %s954_s0 }
 0xfc3   :  { %v666_v45 = vpop.permute.xlu1 %665 }
 0xfc4   :  { %v1150_v46 = vadd.f32 %v666_v45, %v658_v44 }
 0xfc6   :  { %885 = vtanh.f32 %v1150_v46  ;;  %v743_v39 = vrot.slane %v1150_v46, 7 }
 0xfcc   :  { %v886_v47 = vpop.eup %885 }
 0xfcd   :  { %671 = vrot.lane.b32.xlu2 %v886_v47, %s954_s0 }
0x1027   :  { %v672_v48 = vpop.permute.xlu2 %671 }
0x1028   :  { %v674_v49 = vmul.f32 %v672_v48, %v652_v41 }
0x102a   :  { %v675_v51 = vperm.slane %v674_v49, 6 }
0x102c   :  { %v679_v57 = vmul.f32 %v1014_v5, %v675_v51  ;;  %v677_v58 = vmul.f32 %v1006_v63, %v675_v51  ;;  %v676_v60 = vmul.f32 %v1008_v0, %v675_v51  ;;  %v678_v52 = vmul.f32 %v1002_v59, %v675_v51 }
0x102e   :  { %690 = vrot.lane.b32.xlu2 %v679_v57, %s956_s1  ;;  %686 = vrot.lane.b32.xlu1 %v677_v58, %s956_s1  ;;  %v35_v57 = vld [vmem:[#allocation2 + $0x2a] sm:$0x1] }
0x102f   :  { %684 = vrot.lane.b32.xlu0 %v676_v60, %s956_s1  ;;  %v777_v58 = vrot.slane %v35_v57, 1 }
0x1037   :  { %688 = vrot.lane.b32.xlu0 %v678_v52, %s956_s1 }
0x1088   :  { %v691_v63 = vpop.permute.xlu2 %690 }
0x1089   :  { %v705_v4 = vsel %vm173_vm10, %v691_v63, 0.0 }
0x10a0   :  { %v687_v61 = vpop.permute.xlu1 %686 }
0x10a1   :  { %v685_v62 = vpop.permute.xlu0 %684  ;;  %v699_v1 = vsel %vm173_vm10, %v687_v61, 0.0 }
0x10a2   :  { %700 = vadd.xlane.f32.xlu0 %v699_v1  ;;  %v696_v5 = vsel %vm173_vm10, %v685_v62, 0.0 }
0x10a3   :  { %697 = vadd.xlane.f32.xlu1 %v696_v5 }
0x10a9   :  { %v689_v0 = vpop.permute.xlu0 %688 }
0x10aa   :  { %v702_v53 = vsel %vm173_vm10, %v689_v0, 0.0 }
0x10ab   :  { %706 = vadd.xlane.f32.xlu1 %v705_v4  ;;  %703 = vadd.xlane.f32.xlu2 %v702_v53 }
0x1115   :  { %v701_v59 = vpop.xlane.xlu0 %700 }
0x1116   :  { %v698_v54 = vpop.xlane.xlu1 %697  ;;  %v709_v7 = vmul.f32 %v896_v50, %v701_v59 }
0x1117   :  { %v708_v56 = vmul.f32 %v895_v55, %v698_v54 }
0x1119   :  { %v712_v11 = vadd.f32 %v709_v7, %v708_v56 }
0x111e   :  { %v707_v8 = vpop.xlane.xlu1 %706  ;;  %v704_v10 = vpop.xlane.xlu2 %703 }
0x111f   :  { %v710_v13 = vmul.f32 %v897_v12, %v704_v10  ;;  %v711_v15 = vmul.f32 %v898_v14, %v707_v8 }
0x1121   :  { %v713_v16 = vadd.f32 %v712_v11, %v710_v13 }
0x1123   :  { %v714_v17 = vadd.f32 %v713_v16, %v711_v15 }
0x1125   :  { %v715_v18 = vrot.slane %v714_v17, 4 }
0x1127   :  { %v716_v19 = vadd.f32 %v715_v18, %v714_v17 }
0x1129   :  { %v717_v20 = vrot.slane %v716_v19, 2 }
0x112b   :  { %v718_v22 = vadd.f32 %v717_v20, %v716_v19 }
0x112d   :  { %v719_v23 = vrot.slane %v718_v22, 1 }
0x112f   :  { %v720_v24 = vadd.f32 %v719_v23, %v718_v22 }
0x1131   :  { %v721_v25 = vadd.f32 %v720_v24, %v991_v21 }
0x1133   :  { %887 = vtanh.f32 %v721_v25  ;;  %v812_v27 = vmul.f32 -1.442695, %v721_v25 }
0x1135   :  { %889 = vpow2.f32 %v812_v27 }
0x1139   :  { %v888_v26 = vpop.eup %887 }
0x113a   :  { %747 = vrot.lane.b32.xlu0 %v888_v26, %s954_s0 }
0x113b   :  { %v890_v28 = vpop.eup %889 }
0x113c   :  { %v725_v29 = vadd.f32 1.0, %v890_v28 }
0x113e   :  { %891 = vrcp.f32 %v725_v29  ;;  %v737_v9 = vand.u32 2147483648, %v725_v29  ;;  %vm731_vm4 = vweird.f32 %v725_v29  ;;  %v735_v32 = vand.u32 2147483647, %v725_v29 }
0x1140   :  { %v738_v33 = vor.u32 1.1754944e-38, %v737_v9  ;;  %vm736_vm6 = vcmp.eq.f32.partialorder %v735_v32, 8.507059e+37 }
0x1142   :  { %764 = vrot.lane.b32.xlu0 %v763_v38, %s956_s1 }
0x1144   :  { %v892_v30 = vpop.eup %891 }
0x1145   :  { %v727_v2 = vmul.f32 %v892_v30, %v725_v29  ;;  %vm732_vm10 = vweird.f32 %v892_v30 }
0x1146   :  { %vm733_vm5 = vmor %vm731_vm4, %vm732_vm10 }
0x1147   :  { %v728_v3 = vsub.f32 1.0, %v727_v2 }
0x1149   :  { %v729_v31 = vmul.f32 %v892_v30, %v728_v3 }
0x114b   :  { %v730_v6 = vadd.f32 %v892_v30, %v729_v31 }
0x114d   :  { %v734_v21 = vsel %vm733_vm5, %v892_v30, %v730_v6 }
0x114e   :  { %v739_v35 = vsel %vm736_vm6, %v738_v33, %v734_v21 }
0x114f   :  { %v745_v40 = vmul.f32 %v743_v39, %v739_v35 }
0x11ac   :  { %v748_v34 = vpop.permute.xlu0 %747 }
0x11ad   :  { %v750_v36 = vmul.f32 %v748_v34, %v739_v35 }
0x11af   :  { %752 = vrot.lane.b32.xlu2 %v750_v36, %s954_s0 }
0x11b4   :  { %v765_v45 = vpop.permute.xlu0 %764 }
0x1209   :  { %v753_v41 = vpop.permute.xlu2 %752 }
0x120a   :  { %v755_v42 = vadd.f32 %v753_v41, %v745_v40 }
0x120c   :  { %893 = vtanh.f32 %v755_v42 }
0x1212   :  { %v894_v43 = vpop.eup %893 }
0x1213   :  { %758 = vrot.lane.b32.xlu1 %v894_v43, %s954_s0 }
0x1285   :  { %v759_v44 = vpop.permute.xlu1 %758 }
0x1286   :  { %v761_v47 = vmul.f32 %v759_v44, %v739_v35 }
0x1288   :  { %v767_v48 = vmul.f32 %v765_v45, %v761_v47 }
0x128a   :  { %769 = vrot.lane.b32.xlu2 %v767_v48, %s956_s1 }
0x12e4   :  { %v770_v49 = vpop.permute.xlu2 %769 }
0x12e5   :  { %v773_v51 = vsel %vm772_vm7, %v770_v49, 0.0 }
0x12e6   :  { %774 = vadd.xlane.f32.xlu0 %v773_v51 }
0x1359   :  { %v775_v46 = vpop.xlane.xlu0 %774 }
0x135a   :  { %v779_v60 = vadd.f32 %v777_v58, %v775_v46 }
0x135c   :  { %781 = vst.msk [vmem:[#allocation5 - $0x7] sm:$0x80] %vm780_vm8, %v779_v60 }
0x135d   :  { %792 = dma.vmem_to_hbm [thread:$0]  %s788_s19, 16, %s790_s22, [#allocation4]  }
0x135e   :  { %949 = dma.done.wait [#allocation4], 16  }
0x135f   :  { %950 = vsyncadd [#allocation4], 4294967280 }
0x1360   :  { %797 = vsyncpa [#allocation3], 1 }
0x1361   :  { %798 = vsyncpa [#allocation4], 1 }

</bundles_post_ra>
